<compile_context>
chip_gen: v7x
topology: tpu7x:2x2x1
jax: 0.10.0
libtpu: 0.0.40
codegen_flags: <defaults>
</compile_context>

<pallas_src>
import functools
import numpy as np
import jax
import jax.numpy as jnp
from jax.experimental import pallas as pl
from jax.experimental.pallas import tpu as pltpu


def _rup(x, m):
    return ((x + m - 1) // m) * m


# --------------------------------------------------------------------------
# Pallas kernel: tiled matmul with fused BN scale/shift + activation epilogue
# --------------------------------------------------------------------------

def _matmul_bn_act_kernel(a_ref, b_ref, s_ref, t_ref, o_ref, *, act):
    # o_ref is the f32 accumulator (k-invariant output block).
    @pl.when(pl.program_id(2) == 0)
    def _init():
        o_ref[...] = jnp.zeros_like(o_ref)

    o_ref[...] += jnp.dot(a_ref[...], b_ref[...],
                          preferred_element_type=jnp.float32)

    @pl.when(pl.program_id(2) == pl.num_programs(2) - 1)
    def _fin():
        r = o_ref[...] * s_ref[...] + t_ref[...]
        if act == "relu":
            r = jnp.maximum(r, 0.0)
        o_ref[...] = r


_FULL_K_MAX = 4096   # bf16 128x4096 A tile = 1 MiB (double-buffered: 2 MiB) -> OK everywhere


def matmul_bn_act(a, b, scale, shift, act=None, tm=128, tn=128):
    """act((a @ b) * scale + shift) with per-column scale/shift.

    a, b are cast to bf16 (MXU-native); accumulation and epilogue are f32.
    """
    M, K = a.shape
    K2, N = b.shape
    assert K == K2
    Mp, Np = _rup(M, tm), _rup(N, tn)

    a = a.astype(jnp.bfloat16)
    b = b.astype(jnp.bfloat16)
    scale = scale.astype(jnp.float32)
    shift = shift.astype(jnp.float32)

    if Mp != M:                                  # usually a no-op (M already aligned)
        a = jnp.pad(a, ((0, Mp - M), (0, 0)))
    if Np != N:                                  # only pads the small weight matrix
        b = jnp.pad(b, ((0, 0), (0, Np - N)))
        scale = jnp.pad(scale, (0, Np - N))
        shift = jnp.pad(shift, (0, Np - N))

    if K <= _FULL_K_MAX:
        # Full-K tile: no K padding, single reduction step, pure 2-D parallel grid.
        tk, Kp = K, K
    else:
        Kp = _rup(K, 512)
        tk = 512
        a = jnp.pad(a, ((0, 0), (0, Kp - K)))
        b = jnp.pad(b, ((0, Kp - K), (0, 0)))

    s_p = scale.reshape(1, Np)
    t_p = shift.reshape(1, Np)

    out = pl.pallas_call(
        functools.partial(_matmul_bn_act_kernel, act=act),
        out_shape=jax.ShapeDtypeStruct((Mp, Np), jnp.float32),
        grid_spec=pltpu.PrefetchScalarGridSpec(
            num_scalar_prefetch=0,
            grid=(Mp // tm, Np // tn, Kp // tk),
            in_specs=[
                pl.BlockSpec((tm, tk), lambda i, j, k: (i, k)),
                pl.BlockSpec((tk, tn), lambda i, j, k: (k, j)),
                pl.BlockSpec((1, tn), lambda i, j, k: (0, j)),
                pl.BlockSpec((1, tn), lambda i, j, k: (0, j)),
            ],
            out_specs=pl.BlockSpec((tm, tn), lambda i, j, k: (i, j)),
        ),
        compiler_params=pltpu.CompilerParams(
            dimension_semantics=("parallel", "parallel", "arbitrary"),
            vmem_limit_bytes=32 * 1024 * 1024),
    )(a, b, s_p, t_p)
    return out[:M, :N]


# --------------------------------------------------------------------------
# Dilated 3x3 "same" convolution via im2col (built in bf16)  +  matmul kernel
# --------------------------------------------------------------------------

def im2col_dilated3x3(x, dilation):
    """x: (N,H,W,C) bf16, stride 1, padding == dilation (spatial preserved)."""
    N, H, W, C = x.shape
    p = dilation
    xp = jnp.pad(x, ((0, 0), (p, p), (p, p), (0, 0)))
    cols = []
    for i in range(3):
        for j in range(3):
            h0, w0 = i * dilation, j * dilation
            cols.append(xp[:, h0:h0 + H, w0:w0 + W, :])
    col = jnp.concatenate(cols, axis=-1)        # (N, H, W, 9*C)
    return col.reshape(N * H * W, 9 * C)


def _fold_bn(w, b, gamma, beta, mean, var, eps=1e-5):
    """Fold Conv bias + BatchNorm(running stats) into per-channel scale/shift.

    Returns (w2, scale, shift) with w2 shaped (kh*kw*cin, cout) matching the
    im2col column ordering (tap-major, channel-minor).
    """
    cout, cin, kh, kw = w.shape
    w2 = jnp.transpose(w, (2, 3, 1, 0)).reshape(kh * kw * cin, cout)
    s = gamma / jnp.sqrt(var + eps)
    t = beta - mean * s + b * s
    return w2, s, t


def dilated_conv_forward(params, x_nchw):
    """DilatedConv.forward.  x_nchw: (N, in_c, H, W) f32 -> (N, out_c, H, W) f32."""
    x = jnp.transpose(x_nchw.astype(jnp.float32), (0, 2, 3, 1))   # NHWC
    x = x.astype(jnp.bfloat16)                                    # bf16 col matrices
    N, H, W, C = x.shape

    branch_outs = []
    for name, dilation in (("c1", 1), ("c2", 3), ("c3", 6), ("c4", 9)):
        p = params[name]
        col = im2col_dilated3x3(x, dilation)                      # (N*H*W, 9*C) bf16
        y = matmul_bn_act(col, p["w2"], p["scale"], p["shift"], act="relu")
        branch_outs.append(y)                                     # (N*H*W, out_c) f32

    cat = jnp.concatenate(branch_outs, axis=-1)                   # (N*H*W, 4*out_c)

    p5 = params["c5"]
    y = matmul_bn_act(cat, p5["w2"], p5["scale"], p5["shift"], act="relu")
    out_c = p5["w2"].shape[1]
    y = y.reshape(N, H, W, out_c)
    return jnp.transpose(y, (0, 3, 1, 2))                         # NCHW


# --------------------------------------------------------------------------
# Deterministic parameter construction
# --------------------------------------------------------------------------

class PGen:
    def __init__(self, seed):
        self._key = jax.random.PRNGKey(seed)
        self._n = 0

    def draw(self, shape, scale):
        self._n += 1
        k = jax.random.fold_in(self._key, self._n)
        return jax.random.normal(k, shape, jnp.float32) * jnp.float32(scale)


def make_conv_bn(pg, cin, cout, k):
    w = pg.draw((cout, cin, k, k), np.sqrt(2.0 / (cin * k * k)))
    b = pg.draw((cout,), 0.01)
    gamma = 1.0 + pg.draw((cout,), 0.02)
    beta = pg.draw((cout,), 0.02)
    mean = pg.draw((cout,), 0.02)
    var = jnp.ones((cout,), jnp.float32)
    w2, s, t = _fold_bn(w, b, gamma, beta, mean, var)
    return {"w2": w2, "scale": s, "shift": t}


def make_dilated_conv_params(seed, in_c, out_c):
    pg = PGen(seed)
    return {
        "c1": make_conv_bn(pg, in_c, out_c, 3),
        "c2": make_conv_bn(pg, in_c, out_c, 3),
        "c3": make_conv_bn(pg, in_c, out_c, 3),
        "c4": make_conv_bn(pg, in_c, out_c, 3),
        "c5": make_conv_bn(pg, 4 * out_c, out_c, 1),
    }


# --------------------------------------------------------------------------
# Main
# --------------------------------------------------------------------------

if __name__ == "__main__":
    in_c, out_c = 4, 8
    batch, spatial = 2, 16

    params = make_dilated_conv_params(seed=0, in_c=in_c, out_c=out_c)
    x = jax.random.normal(jax.random.PRNGKey(0),
                          (batch, in_c, spatial, spatial), jnp.float32)

    fwd = jax.jit(functools.partial(dilated_conv_forward, params))
    y = fwd(x)
    y = jax.block_until_ready(y)

    assert y.shape == (batch, out_c, spatial, spatial), y.shape
    assert bool(jnp.isfinite(y).all())
    print("KERNEL_OK")
</pallas_src>

<mosaic_0001>
module attributes {stable_mosaic.version = 11 : i64} {
  func.func @_matmul_bn_act_kernel(%arg0: i32, %arg1: i32, %arg2: i32, %arg3: memref<128x36xbf16, #tpu.memory_space<vmem>>, %arg4: memref<36x128xbf16, #tpu.memory_space<vmem>>, %arg5: memref<1x128xf32, #tpu.memory_space<vmem>>, %arg6: memref<1x128xf32, #tpu.memory_space<vmem>>, %arg7: memref<128x128xf32, #tpu.memory_space<vmem>>) attributes {dimension_semantics = [#tpu.dimension_semantics<parallel>, #tpu.dimension_semantics<parallel>, #tpu.dimension_semantics<arbitrary>], iteration_bounds = array<i64: 4, 1, 1>, scalar_prefetch = 0 : i64, scratch_operands = 0 : i64, tpu.core_type = #tpu.core_type<tc>, window_params = [{transform_indices = @transform_0, window_bounds = array<i64: 128, 36>}, {transform_indices = @transform_1, window_bounds = array<i64: 36, 128>}, {transform_indices = @transform_2, window_bounds = array<i64: 1, 128>}, {transform_indices = @transform_3, window_bounds = array<i64: 1, 128>}, {transform_indices = @transform_4, window_bounds = array<i64: 128, 128>}]} {
    %c0_i32 = arith.constant 0 : i32
    %0 = arith.cmpi eq, %arg2, %c0_i32 : i32
    %1 = arith.extui %0 : i1 to i32
    %c0_i32_0 = arith.constant 0 : i32
    %2 = arith.cmpi ne, %1, %c0_i32_0 : i32
    scf.if %2 {
      %cst_10 = arith.constant 0.000000e+00 : f32
      %12 = vector.broadcast %cst_10 : f32 to vector<128x128xf32>
      %c0_11 = arith.constant 0 : index
      %c0_12 = arith.constant 0 : index
      %13 = vector.load %arg7[%c0_11, %c0_12] : memref<128x128xf32, #tpu.memory_space<vmem>>, vector<128x128xf32>
      tpu.vector_store %arg7[%c0_11, %c0_12], %12 {strides = array<i32>} : memref<128x128xf32, #tpu.memory_space<vmem>>, vector<128x128xf32>,
    } else {
    }
    %c0 = arith.constant 0 : index
    %c0_1 = arith.constant 0 : index
    %3 = vector.load %arg7[%c0, %c0_1] : memref<128x128xf32, #tpu.memory_space<vmem>>, vector<128x128xf32>
    %c0_2 = arith.constant 0 : index
    %c0_3 = arith.constant 0 : index
    %4 = vector.load %arg3[%c0_2, %c0_3] : memref<128x36xbf16, #tpu.memory_space<vmem>>, vector<128x36xbf16>
    %c0_4 = arith.constant 0 : index
    %c0_5 = arith.constant 0 : index
    %5 = vector.load %arg4[%c0_4, %c0_5] : memref<36x128xbf16, #tpu.memory_space<vmem>>, vector<36x128xbf16>
    %cst = arith.constant dense<0.000000e+00> : vector<128x128xf32>
    %6 = tpu.matmul %4, %5, %cst {dimension_numbers = #tpu.dot_dimension_numbers<[1], [0], [0], [1], [0, 0, 1, 1], [], []>} : vector<128x36xbf16>, vector<36x128xbf16>, vector<128x128xf32> -> vector<128x128xf32>
    %7 = arith.addf %3, %6 : vector<128x128xf32>
    %c0_6 = arith.constant 0 : index
    %c0_7 = arith.constant 0 : index
    %8 = vector.load %arg7[%c0_6, %c0_7] : memref<128x128xf32, #tpu.memory_space<vmem>>, vector<128x128xf32>
    tpu.vector_store %arg7[%c0_6, %c0_7], %7 {strides = array<i32>} : memref<128x128xf32, #tpu.memory_space<vmem>>, vector<128x128xf32>,
    %c0_i32_8 = arith.constant 0 : i32
    %9 = arith.cmpi eq, %arg2, %c0_i32_8 : i32
    %10 = arith.extui %9 : i1 to i32
    %c0_i32_9 = arith.constant 0 : i32
    %11 = arith.cmpi ne, %10, %c0_i32_9 : i32
    scf.if %11 {
      %c0_10 = arith.constant 0 : index
      %c0_11 = arith.constant 0 : index
      %12 = vector.load %arg7[%c0_10, %c0_11] : memref<128x128xf32, #tpu.memory_space<vmem>>, vector<128x128xf32>
      %c0_12 = arith.constant 0 : index
      %c0_13 = arith.constant 0 : index
      %13 = vector.load %arg5[%c0_12, %c0_13] : memref<1x128xf32, #tpu.memory_space<vmem>>, vector<1x128xf32>
      %14 = vector.broadcast %13 : vector<1x128xf32> to vector<128x128xf32>
      %15 = arith.mulf %12, %14 : vector<128x128xf32>
      %c0_14 = arith.constant 0 : index
      %c0_15 = arith.constant 0 : index
      %16 = vector.load %arg6[%c0_14, %c0_15] : memref<1x128xf32, #tpu.memory_space<vmem>>, vector<1x128xf32>
      %17 = vector.broadcast %16 : vector<1x128xf32> to vector<128x128xf32>
      %18 = arith.addf %15, %17 : vector<128x128xf32>
      %cst_16 = arith.constant 0.000000e+00 : f32
      %19 = vector.broadcast %cst_16 : f32 to vector<128x128xf32>
      %20 = arith.maximumf %18, %19 : vector<128x128xf32>
      %c0_17 = arith.constant 0 : index
      %c0_18 = arith.constant 0 : index
      %21 = vector.load %arg7[%c0_17, %c0_18] : memref<128x128xf32, #tpu.memory_space<vmem>>, vector<128x128xf32>
      tpu.vector_store %arg7[%c0_17, %c0_18], %20 {strides = array<i32>} : memref<128x128xf32, #tpu.memory_space<vmem>>, vector<128x128xf32>,
    } else {
    }
    return
  }
  func.func @transform_0(%arg0: i32, %arg1: i32, %arg2: i32) -> (i32, i32) {
    %c0_i32 = arith.constant 0 : i32
    return %arg0, %arg2 : i32, i32
  }
  func.func @transform_1(%arg0: i32, %arg1: i32, %arg2: i32) -> (i32, i32) {
    %c0_i32 = arith.constant 0 : i32
    return %arg2, %arg1 : i32, i32
  }
  func.func @transform_2(%arg0: i32, %arg1: i32, %arg2: i32) -> (i32, i32) {
    %c0_i32 = arith.constant 0 : i32
    %c0_i32_0 = arith.constant 0 : i32
    return %c0_i32, %arg1 : i32, i32
  }
  func.func @transform_3(%arg0: i32, %arg1: i32, %arg2: i32) -> (i32, i32) {
    %c0_i32 = arith.constant 0 : i32
    %c0_i32_0 = arith.constant 0 : i32
    return %c0_i32, %arg1 : i32, i32
  }
  func.func @transform_4(%arg0: i32, %arg1: i32, %arg2: i32) -> (i32, i32) {
    %c0_i32 = arith.constant 0 : i32
    return %arg0, %arg1 : i32, i32
  }
}

module attributes {stable_mosaic.version = 11 : i64} {
  func.func @_matmul_bn_act_kernel(%arg0: i32, %arg1: i32, %arg2: i32, %arg3: memref<128x32xbf16, #tpu.memory_space<vmem>>, %arg4: memref<32x128xbf16, #tpu.memory_space<vmem>>, %arg5: memref<1x128xf32, #tpu.memory_space<vmem>>, %arg6: memref<1x128xf32, #tpu.memory_space<vmem>>, %arg7: memref<128x128xf32, #tpu.memory_space<vmem>>) attributes {dimension_semantics = [#tpu.dimension_semantics<parallel>, #tpu.dimension_semantics<parallel>, #tpu.dimension_semantics<arbitrary>], iteration_bounds = array<i64: 4, 1, 1>, scalar_prefetch = 0 : i64, scratch_operands = 0 : i64, tpu.core_type = #tpu.core_type<tc>, window_params = [{transform_indices = @transform_0, window_bounds = array<i64: 128, 32>}, {transform_indices = @transform_1, window_bounds = array<i64: 32, 128>}, {transform_indices = @transform_2, window_bounds = array<i64: 1, 128>}, {transform_indices = @transform_3, window_bounds = array<i64: 1, 128>}, {transform_indices = @transform_4, window_bounds = array<i64: 128, 128>}]} {
    %c0_i32 = arith.constant 0 : i32
    %0 = arith.cmpi eq, %arg2, %c0_i32 : i32
    %1 = arith.extui %0 : i1 to i32
    %c0_i32_0 = arith.constant 0 : i32
    %2 = arith.cmpi ne, %1, %c0_i32_0 : i32
    scf.if %2 {
      %cst_10 = arith.constant 0.000000e+00 : f32
      %12 = vector.broadcast %cst_10 : f32 to vector<128x128xf32>
      %c0_11 = arith.constant 0 : index
      %c0_12 = arith.constant 0 : index
      %13 = vector.load %arg7[%c0_11, %c0_12] : memref<128x128xf32, #tpu.memory_space<vmem>>, vector<128x128xf32>
      tpu.vector_store %arg7[%c0_11, %c0_12], %12 {strides = array<i32>} : memref<128x128xf32, #tpu.memory_space<vmem>>, vector<128x128xf32>,
    } else {
    }
    %c0 = arith.constant 0 : index
    %c0_1 = arith.constant 0 : index
    %3 = vector.load %arg7[%c0, %c0_1] : memref<128x128xf32, #tpu.memory_space<vmem>>, vector<128x128xf32>
    %c0_2 = arith.constant 0 : index
    %c0_3 = arith.constant 0 : index
    %4 = vector.load %arg3[%c0_2, %c0_3] : memref<128x32xbf16, #tpu.memory_space<vmem>>, vector<128x32xbf16>
    %c0_4 = arith.constant 0 : index
    %c0_5 = arith.constant 0 : index
    %5 = vector.load %arg4[%c0_4, %c0_5] : memref<32x128xbf16, #tpu.memory_space<vmem>>, vector<32x128xbf16>
    %cst = arith.constant dense<0.000000e+00> : vector<128x128xf32>
    %6 = tpu.matmul %4, %5, %cst {dimension_numbers = #tpu.dot_dimension_numbers<[1], [0], [0], [1], [0, 0, 1, 1], [], []>} : vector<128x32xbf16>, vector<32x128xbf16>, vector<128x128xf32> -> vector<128x128xf32>
    %7 = arith.addf %3, %6 : vector<128x128xf32>
    %c0_6 = arith.constant 0 : index
    %c0_7 = arith.constant 0 : index
    %8 = vector.load %arg7[%c0_6, %c0_7] : memref<128x128xf32, #tpu.memory_space<vmem>>, vector<128x128xf32>
    tpu.vector_store %arg7[%c0_6, %c0_7], %7 {strides = array<i32>} : memref<128x128xf32, #tpu.memory_space<vmem>>, vector<128x128xf32>,
    %c0_i32_8 = arith.constant 0 : i32
    %9 = arith.cmpi eq, %arg2, %c0_i32_8 : i32
    %10 = arith.extui %9 : i1 to i32
    %c0_i32_9 = arith.constant 0 : i32
    %11 = arith.cmpi ne, %10, %c0_i32_9 : i32
    scf.if %11 {
      %c0_10 = arith.constant 0 : index
      %c0_11 = arith.constant 0 : index
      %12 = vector.load %arg7[%c0_10, %c0_11] : memref<128x128xf32, #tpu.memory_space<vmem>>, vector<128x128xf32>
      %c0_12 = arith.constant 0 : index
      %c0_13 = arith.constant 0 : index
      %13 = vector.load %arg5[%c0_12, %c0_13] : memref<1x128xf32, #tpu.memory_space<vmem>>, vector<1x128xf32>
      %14 = vector.broadcast %13 : vector<1x128xf32> to vector<128x128xf32>
      %15 = arith.mulf %12, %14 : vector<128x128xf32>
      %c0_14 = arith.constant 0 : index
      %c0_15 = arith.constant 0 : index
      %16 = vector.load %arg6[%c0_14, %c0_15] : memref<1x128xf32, #tpu.memory_space<vmem>>, vector<1x128xf32>
      %17 = vector.broadcast %16 : vector<1x128xf32> to vector<128x128xf32>
      %18 = arith.addf %15, %17 : vector<128x128xf32>
      %cst_16 = arith.constant 0.000000e+00 : f32
      %19 = vector.broadcast %cst_16 : f32 to vector<128x128xf32>
      %20 = arith.maximumf %18, %19 : vector<128x128xf32>
      %c0_17 = arith.constant 0 : index
      %c0_18 = arith.constant 0 : index
      %21 = vector.load %arg7[%c0_17, %c0_18] : memref<128x128xf32, #tpu.memory_space<vmem>>, vector<128x128xf32>
      tpu.vector_store %arg7[%c0_17, %c0_18], %20 {strides = array<i32>} : memref<128x128xf32, #tpu.memory_space<vmem>>, vector<128x128xf32>,
    } else {
    }
    return
  }
  func.func @transform_0(%arg0: i32, %arg1: i32, %arg2: i32) -> (i32, i32) {
    %c0_i32 = arith.constant 0 : i32
    return %arg0, %arg2 : i32, i32
  }
  func.func @transform_1(%arg0: i32, %arg1: i32, %arg2: i32) -> (i32, i32) {
    %c0_i32 = arith.constant 0 : i32
    return %arg2, %arg1 : i32, i32
  }
  func.func @transform_2(%arg0: i32, %arg1: i32, %arg2: i32) -> (i32, i32) {
    %c0_i32 = arith.constant 0 : i32
    %c0_i32_0 = arith.constant 0 : i32
    return %c0_i32, %arg1 : i32, i32
  }
  func.func @transform_3(%arg0: i32, %arg1: i32, %arg2: i32) -> (i32, i32) {
    %c0_i32 = arith.constant 0 : i32
    %c0_i32_0 = arith.constant 0 : i32
    return %c0_i32, %arg1 : i32, i32
  }
  func.func @transform_4(%arg0: i32, %arg1: i32, %arg2: i32) -> (i32, i32) {
    %c0_i32 = arith.constant 0 : i32
    return %arg0, %arg1 : i32, i32
  }
}

</mosaic_0001>

<bundles_post_ra>
// kernel: dilated_conv_forward.8
= control target key start
LH: loop header
LB: loop body
LE: loop exit
PB: predicated region body
PF: predicated region fallthrough
CT: control target
= control target key end

     0   :  { %s952_s15 = smov 0   ;;  %s954_s16 = smov 0   ;;  %s1048_s0 = inlined_call_operand.vmem [shape: bf16[512,36], index: 0, kind: input, shape index: {}]   ;;  %s1049_s1 = inlined_call_operand.vmem [shape: bf16[36,128], index: 1, kind: input, shape index: {}]   ;;  %s1050_s2 = inlined_call_operand.vmem [shape: f32[1,128], index: 2, kind: input, shape index: {}]   ;;  %s1051_s3 = inlined_call_operand.vmem [shape: f32[1,128], index: 3, kind: input, shape index: {}]   ;;  %s1052_s4 = inlined_call_operand.vmem [shape: f32[512,128], index: 4, kind: output, shape index: {}]  }
   0x1   :  { %s956_s17 = smov 0  }
   0x2 LB: > { %s33_s18 = sadd.s32 1, %s921_s16  ;;  %p798_p0 = scmp.ge.s32.totalorder %s925_s17, 1  ;;  %s925_s17 = sphi %s956_s17, %s14_s17   ;;  %s921_s16 = sphi %s954_s16, %s1054_s16   ;;  %s917_s15 = sphi %s952_s15, %s1053_s15  }
   0x3   : > { %p35_p1 = scmp.ge.s32.totalorder %s33_s18, 4  ;;  %p221_p2 = scmp.lt.s32.totalorder %s925_s17, 5 }
   0x5   : > { %s1056_s18 = smov (%p35_p1, %s33_s18), 0  ;;  %p222_p3 = pnand %p798_p0, %p221_p2 }
   0x6   : > { %v892_v0 = vld [vmem:[%s1049_s1] sm:$0xff] (!%p222_p3)   ;;  %v893_v1 = vld [vmem:[%s1049_s1 + $0x8] sm:$0xff] (!%p222_p3)   ;;  %s799_s23 = sshll.u32 (!%p222_p3), %s917_s15, 4  ;;  %v894_v2 = vld [vmem:[%s1049_s1 + $0x10] ss:$0 sps:$4 sm:$0x33] (!%p222_p3)  }
   0x7   : > { %225 = sbr.rel (%p222_p3) target bundleno = 250 (0xfa), region = 36  ;;  %837 = vmatprep.subr.bf16.mxu0 (!%p222_p3), %v892_v0  ;;  %859 = vmatprep.subr.bf16.mxu1 (!%p222_p3), %v892_v0  ;;  %p268_p4 = scmp.lt.s32.totalorder (!%p222_p3), %s799_s23, 63  ;;  %vm438_vm0 = vcmask (!%p222_p3), 1041408   ;;  %vm413_vm1 = vcmask (!%p222_p3), 293888   ;;  %v822_v13 = vld [vmem:[%s1050_s2] ss:$0 sm:$0xff] (!%p222_p3) }
   0x8   : > { %838 = vmatpush3.bf16.msra.mxu0 (!%p222_p3), %v892_v0  ;;  %862 = vmatpush3.bf16.msra.mxu1 (!%p222_p3), %v892_v0  ;;  %v440_v3 = vsel (!%p222_p3), %vm438_vm0, %v894_v2, 0  ;;  %v999_v17 = vld [vmem:[%s1051_s3] ss:$0 sm:$0xff] (!%p222_p3) }
   0x9   : > { %839 = vmatprep.subr.bf16.mxu0 (!%p222_p3), %v893_v1  ;;  %860 = vmatprep.subr.bf16.mxu1 (!%p222_p3), %v893_v1 }
   0xc   : > { %840 = vmatpush3.bf16.msra.mxu0 (!%p222_p3), %v893_v1  ;;  %863 = vmatpush3.bf16.msra.mxu1 (!%p222_p3), %v893_v1 }
   0xd   : > { %865 = vmatprep.subr.msk.bf16.mxu0 (!%p222_p3), %vm438_vm0, %v894_v2  ;;  %866 = vmatprep.subr.msk.bf16.mxu1 (!%p222_p3), %vm438_vm0, %v894_v2 }
   0xe   : > { %s1058_s23 = smov (!%p268_p4, %s799_s23), 63 }
   0xf   : > { %s800_s26 = sshll.u32 %s1058_s23, 2  ;;  %s802_s8 = sshll.u32 %s1058_s23, 3 }
  0x10   : > { %s274_s29 = scalar_lea.vmem %s1048_s0, %s800_s26  ;;  %842 = vmatpush3.bf16.msra.mxu0 %v440_v3  ;;  %864 = vmatpush3.bf16.msra.mxu1 %v440_v3  ;;  %s1007_s11 = scalar_lea.vmem %s1052_s4, %s802_s8 }
  0x11   : > { %v895_v4 = vld [vmem:[%s274_s29] sm:$0xff]   ;;  %v897_v6 = vld [vmem:[%s274_s29 + $0x8] sm:$0xff]   ;;  %v899_v8 = vld [vmem:[%s274_s29 + $0x10] sm:$0xff]  }
  0x12   : > { %v896_v5 = vld [vmem:[%s274_s29 + $0x20] sm:$0xff]   ;;  %843 = vmatprep.mubr.msk.bf16.mxu0 %vm413_vm1, %v895_v4  ;;  %v898_v7 = vld [vmem:[%s274_s29 + $0x28] sm:$0xff]   ;;  %v900_v9 = vld [vmem:[%s274_s29 + $0x30] sm:$0xff]  }
  0x13   : > { %851 = vmatprep.mubr.msk.bf16.mxu1 %vm413_vm1, %v896_v5  ;;  %844 = vmatmul.mubr.msk.bf16.vlgmr.msra.gmra.mrb[0].mxu0 %vm413_vm1, %v897_v6  ;;  %v901_v10 = vld [vmem:[%s274_s29 + $0x18] sm:$0xff]  }
  0x14   : > { %852 = vmatmul.mubr.msk.bf16.vlgmr.msra.gmra.mrb[0].mxu1 %vm413_vm1, %v898_v7  ;;  %847 = vmatprep.mubr.msk.bf16.mxu0 %vm413_vm1, %v899_v8  ;;  %v902_v11 = vld [vmem:[%s274_s29 + $0x38] sm:$0xff]  }
  0x15   : > { %855 = vmatprep.mubr.msk.bf16.mxu1 %vm413_vm1, %v900_v9 }
  0x1b   : > { %848 = vmatmul.mubr.msk.bf16.gmra.mrb[4].mxu0 %vm413_vm1, %v901_v10 }
  0x1c   : > { %856 = vmatmul.mubr.msk.bf16.gmra.mrb[4].mxu1 %vm413_vm1, %v902_v11 }
  0xe6   : > { %v845_v12 = vpop.f32.mrb[0].mxu0 }
  0xe7   : > { %v853_v14 = vpop.f32.mrb[0].mxu1  ;;  %v476_v15 = vpop.f32.mrb[1].mxu0  ;;  %v599_v20 = vmul.f32 %v845_v12, %v822_v13 }
  0xe8   : > { %v508_v16 = vpop.f32.mrb[1].mxu1  ;;  %v846_v18 = vpop.f32.mrb[2].mxu0  ;;  %v607_v21 = vmul.f32 %v853_v14, %v822_v13  ;;  %v597_v24 = vmul.f32 %v822_v13, %v476_v15 }
  0xe9   : > { %v854_v19 = vpop.f32.mrb[2].mxu1  ;;  %v479_v22 = vpop.f32.mrb[3].mxu0  ;;  %v605_v25 = vmul.f32 %v822_v13, %v508_v16  ;;  %v622_v26 = vadd.f32 %v999_v17, %v599_v20  ;;  %v600_v28 = vmul.f32 %v846_v18, %v822_v13 }
  0xea   : > { %v511_v23 = vpop.f32.mrb[3].mxu1  ;;  %v630_v27 = vadd.f32 %v999_v17, %v607_v21  ;;  %v608_v29 = vmul.f32 %v854_v19, %v822_v13  ;;  %v620_v30 = vadd.f32 %v999_v17, %v597_v24  ;;  %v598_v32 = vmul.f32 %v822_v13, %v479_v22 }
  0xeb   : > { %v628_v31 = vadd.f32 %v999_v17, %v605_v25  ;;  %v606_v33 = vmul.f32 %v822_v13, %v511_v23  ;;  %v638_v34 = vmax.f32 %v622_v26, 0.0  ;;  %v623_v36 = vadd.f32 %v999_v17, %v600_v28 }
  0xec   : > { %v646_v35 = vmax.f32 %v630_v27, 0.0  ;;  %v631_v37 = vadd.f32 %v999_v17, %v608_v29  ;;  %v636_v38 = vmax.f32 %v620_v30, 0.0  ;;  %v621_v40 = vadd.f32 %v999_v17, %v598_v32 }
  0xed   : > { %v644_v39 = vmax.f32 %v628_v31, 0.0  ;;  %v629_v41 = vadd.f32 %v999_v17, %v606_v33  ;;  %654 = vst [vmem:[%s1007_s11 + $0x10] sm:$0xff] %v638_v34  ;;  %v639_v44 = vmax.f32 %v623_v36, 0.0 }
  0xee   : > { %v849_v42 = vpop.f32.mrb[4].mxu0  ;;  %662 = vst [vmem:[%s1007_s11 + $0x50] sm:$0xff] %v646_v35  ;;  %v647_v45 = vmax.f32 %v631_v37, 0.0  ;;  %652 = vst [vmem:[%s1007_s11] sm:$0xff] %v636_v38  ;;  %v637_v48 = vmax.f32 %v621_v40, 0.0 }
  0xef   : > { %v857_v43 = vpop.f32.mrb[4].mxu1  ;;  %v492_v46 = vpop.f32.mrb[5].mxu0  ;;  %660 = vst [vmem:[%s1007_s11 + $0x40] sm:$0xff] %v644_v39  ;;  %v645_v49 = vmax.f32 %v629_v41, 0.0  ;;  %655 = vst [vmem:[%s1007_s11 + $0x18] sm:$0xff] %v639_v44  ;;  %v603_v52 = vmul.f32 %v849_v42, %v822_v13 }
  0xf0   : > { %v524_v47 = vpop.f32.mrb[5].mxu1  ;;  %v850_v50 = vpop.f32.mrb[6].mxu0  ;;  %663 = vst [vmem:[%s1007_s11 + $0x58] sm:$0xff] %v647_v45  ;;  %v611_v53 = vmul.f32 %v857_v43, %v822_v13  ;;  %653 = vst [vmem:[%s1007_s11 + $0x8] sm:$0xff] %v637_v48  ;;  %v601_v56 = vmul.f32 %v822_v13, %v492_v46 }
  0xf1   : > { %v858_v51 = vpop.f32.mrb[6].mxu1  ;;  %v495_v54 = vpop.f32.mrb[7].mxu0  ;;  %661 = vst [vmem:[%s1007_s11 + $0x48] sm:$0xff] %v645_v49  ;;  %v609_v57 = vmul.f32 %v822_v13, %v524_v47  ;;  %v626_v58 = vadd.f32 %v999_v17, %v603_v52  ;;  %v604_v60 = vmul.f32 %v850_v50, %v822_v13 }
  0xf2   : > { %v527_v55 = vpop.f32.mrb[7].mxu1  ;;  %v634_v59 = vadd.f32 %v999_v17, %v611_v53  ;;  %v612_v61 = vmul.f32 %v858_v51, %v822_v13  ;;  %v624_v62 = vadd.f32 %v999_v17, %v601_v56  ;;  %v602_v0 = vmul.f32 %v822_v13, %v495_v54 }
  0xf3   : > { %v632_v63 = vadd.f32 %v999_v17, %v609_v57  ;;  %v610_v1 = vmul.f32 %v822_v13, %v527_v55  ;;  %v642_v2 = vmax.f32 %v626_v58, 0.0  ;;  %v627_v4 = vadd.f32 %v999_v17, %v604_v60 }
  0xf4   : > { %v650_v3 = vmax.f32 %v634_v59, 0.0  ;;  %v635_v5 = vadd.f32 %v999_v17, %v612_v61  ;;  %v640_v6 = vmax.f32 %v624_v62, 0.0  ;;  %v625_v8 = vadd.f32 %v999_v17, %v602_v0 }
  0xf5   : > { %v648_v7 = vmax.f32 %v632_v63, 0.0  ;;  %v633_v9 = vadd.f32 %v999_v17, %v610_v1  ;;  %658 = vst [vmem:[%s1007_s11 + $0x30] sm:$0xff] %v642_v2  ;;  %v643_v10 = vmax.f32 %v627_v4, 0.0 }
  0xf6   : > { %666 = vst [vmem:[%s1007_s11 + $0x70] sm:$0xff] %v650_v3  ;;  %v651_v11 = vmax.f32 %v635_v5, 0.0  ;;  %656 = vst [vmem:[%s1007_s11 + $0x20] sm:$0xff] %v640_v6  ;;  %v641_v12 = vmax.f32 %v625_v8, 0.0 }
  0xf7   : > { %664 = vst [vmem:[%s1007_s11 + $0x60] sm:$0xff] %v648_v7  ;;  %v649_v13 = vmax.f32 %v633_v9, 0.0  ;;  %659 = vst [vmem:[%s1007_s11 + $0x38] sm:$0xff] %v643_v10 }
  0xf8   : > { %667 = vst [vmem:[%s1007_s11 + $0x78] sm:$0xff] %v651_v11  ;;  %657 = vst [vmem:[%s1007_s11 + $0x28] sm:$0xff] %v641_v12 }
  0xf9   : > { %665 = vst [vmem:[%s1007_s11 + $0x68] sm:$0xff] %v649_v13 }
  0xfa PF: > { %s14_s17 = sadd.s32 1, %s925_s17   ;;  %s1053_s15 = smov %s921_s16 }
  0xfb   : > { %p11_p5 = scmp.ge.s32.totalorder %s14_s17, 6   ;;  %s1054_s16 = smov %s1056_s18 }
  0xfd   :  { %13 = sbr.rel (!%p11_p5) target bundleno = 2 (0x2), region = 83 }

// kernel: dilated_conv_forward.9
= control target key start
LH: loop header
LB: loop body
LE: loop exit
PB: predicated region body
PF: predicated region fallthrough
CT: control target
= control target key end

     0   :  { %s935_s15 = smov 0   ;;  %s937_s16 = smov 0   ;;  %s1046_s0 = inlined_call_operand.vmem [shape: bf16[512,32], index: 0, kind: input, shape index: {}]   ;;  %s1047_s1 = inlined_call_operand.vmem [shape: bf16[32,128], index: 1, kind: input, shape index: {}]   ;;  %s1048_s2 = inlined_call_operand.vmem [shape: f32[1,128], index: 2, kind: input, shape index: {}]   ;;  %s1049_s3 = inlined_call_operand.vmem [shape: f32[1,128], index: 3, kind: input, shape index: {}]   ;;  %s1050_s4 = inlined_call_operand.vmem [shape: f32[512,128], index: 4, kind: output, shape index: {}]  }
   0x1   :  { %s939_s17 = smov 0  }
   0x2 LB: > { %s33_s18 = sadd.s32 1, %s904_s16  ;;  %p790_p0 = scmp.ge.s32.totalorder %s908_s17, 1  ;;  %s908_s17 = sphi %s939_s17, %s14_s17   ;;  %s904_s16 = sphi %s937_s16, %s1052_s16   ;;  %s900_s15 = sphi %s935_s15, %s1051_s15  }
   0x3   : > { %p35_p1 = scmp.ge.s32.totalorder %s33_s18, 4  ;;  %p221_p2 = scmp.lt.s32.totalorder %s908_s17, 5 }
   0x5   : > { %s1054_s18 = smov (%p35_p1, %s33_s18), 0  ;;  %p222_p3 = pnand %p790_p0, %p221_p2 }
   0x6   : > { %v876_v0 = vld [vmem:[%s1047_s1] sm:$0xff] (!%p222_p3)   ;;  %s791_s21 = sshll.u32 (!%p222_p3), %s900_s15, 4  ;;  %v877_v1 = vld [vmem:[%s1047_s1 + $0x8] sm:$0xff] (!%p222_p3)   ;;  %vm409_vm0 = vcmask (!%p222_p3), 261120  }
   0x7   : > { %225 = sbr.rel (%p222_p3) target bundleno = 250 (0xfa), region = 36  ;;  %p268_p4 = scmp.lt.s32.totalorder (!%p222_p3), %s791_s21, 63  ;;  %827 = vmatprep.subr.bf16.mxu0 (!%p222_p3), %v876_v0  ;;  %847 = vmatprep.subr.bf16.mxu1 (!%p222_p3), %v876_v0  ;;  %v976_v11 = vld [vmem:[%s1048_s2] ss:$0 sm:$0xff] (!%p222_p3) }
   0x8   : > { %828 = vmatpush3.bf16.msra.mxu0 (!%p222_p3), %v876_v0  ;;  %849 = vmatpush3.bf16.msra.mxu1 (!%p222_p3), %v876_v0  ;;  %v981_v14 = vld [vmem:[%s1049_s3] ss:$0 sm:$0xff] (!%p222_p3) }
   0x9   : > { %829 = vmatprep.subr.bf16.mxu0 (!%p222_p3), %v877_v1  ;;  %848 = vmatprep.subr.bf16.mxu1 (!%p222_p3), %v877_v1 }
   0xc   : > { %830 = vmatpush3.bf16.msra.mxu0 (!%p222_p3), %v877_v1  ;;  %850 = vmatpush3.bf16.msra.mxu1 (!%p222_p3), %v877_v1 }
   0xe   : > { %s1056_s21 = smov (!%p268_p4, %s791_s21), 63 }
   0xf   : > { %s792_s24 = sshll.u32 %s1056_s21, 2  ;;  %s794_s6 = sshll.u32 %s1056_s21, 3 }
  0x10   : > { %s274_s27 = scalar_lea.vmem %s1046_s0, %s792_s24  ;;  %s993_s9 = scalar_lea.vmem %s1050_s4, %s794_s6 }
  0x11   : > { %v878_v2 = vld [vmem:[%s274_s27] sm:$0xff]   ;;  %v880_v4 = vld [vmem:[%s274_s27 + $0x8] sm:$0xff]   ;;  %v882_v6 = vld [vmem:[%s274_s27 + $0x10] sm:$0xff]  }
  0x12   : > { %v879_v3 = vld [vmem:[%s274_s27 + $0x20] sm:$0xff]   ;;  %831 = vmatprep.mubr.msk.bf16.mxu0 %vm409_vm0, %v878_v2  ;;  %v881_v5 = vld [vmem:[%s274_s27 + $0x28] sm:$0xff]   ;;  %v883_v7 = vld [vmem:[%s274_s27 + $0x30] sm:$0xff]  }
  0x13   : > { %839 = vmatprep.mubr.msk.bf16.mxu1 %vm409_vm0, %v879_v3  ;;  %832 = vmatmul.mubr.msk.bf16.vlgmr.msra.gmra.mrb[0].mxu0 %vm409_vm0, %v880_v4  ;;  %v884_v8 = vld [vmem:[%s274_s27 + $0x18] sm:$0xff]  }
  0x14   : > { %840 = vmatmul.mubr.msk.bf16.vlgmr.msra.gmra.mrb[0].mxu1 %vm409_vm0, %v881_v5  ;;  %835 = vmatprep.mubr.msk.bf16.mxu0 %vm409_vm0, %v882_v6  ;;  %v885_v9 = vld [vmem:[%s274_s27 + $0x38] sm:$0xff]  }
  0x15   : > { %843 = vmatprep.mubr.msk.bf16.mxu1 %vm409_vm0, %v883_v7 }
  0x1b   : > { %836 = vmatmul.mubr.msk.bf16.gmra.mrb[4].mxu0 %vm409_vm0, %v884_v8 }
  0x1c   : > { %844 = vmatmul.mubr.msk.bf16.gmra.mrb[4].mxu1 %vm409_vm0, %v885_v9 }
  0xe6   : > { %v833_v10 = vpop.f32.mrb[0].mxu0 }
  0xe7   : > { %v841_v12 = vpop.f32.mrb[0].mxu1  ;;  %v468_v13 = vpop.f32.mrb[1].mxu0  ;;  %v591_v17 = vmul.f32 %v833_v10, %v976_v11 }
  0xe8   : > { %v500_v15 = vpop.f32.mrb[1].mxu1  ;;  %v834_v16 = vpop.f32.mrb[2].mxu0  ;;  %v599_v20 = vmul.f32 %v841_v12, %v976_v11  ;;  %v589_v21 = vmul.f32 %v976_v11, %v468_v13 }
  0xe9   : > { %v842_v18 = vpop.f32.mrb[2].mxu1  ;;  %v471_v19 = vpop.f32.mrb[3].mxu0  ;;  %v614_v23 = vadd.f32 %v981_v14, %v591_v17  ;;  %v597_v24 = vmul.f32 %v976_v11, %v500_v15  ;;  %v592_v25 = vmul.f32 %v834_v16, %v976_v11 }
  0xea   : > { %v503_v22 = vpop.f32.mrb[3].mxu1  ;;  %v622_v26 = vadd.f32 %v981_v14, %v599_v20  ;;  %v612_v27 = vadd.f32 %v981_v14, %v589_v21  ;;  %v600_v28 = vmul.f32 %v842_v18, %v976_v11  ;;  %v590_v29 = vmul.f32 %v976_v11, %v471_v19 }
  0xeb   : > { %v630_v30 = vmax.f32 %v614_v23, 0.0  ;;  %v620_v31 = vadd.f32 %v981_v14, %v597_v24  ;;  %v615_v32 = vadd.f32 %v981_v14, %v592_v25  ;;  %v598_v33 = vmul.f32 %v976_v11, %v503_v22 }
  0xec   : > { %v638_v34 = vmax.f32 %v622_v26, 0.0  ;;  %v628_v35 = vmax.f32 %v612_v27, 0.0  ;;  %v623_v36 = vadd.f32 %v981_v14, %v600_v28  ;;  %v613_v37 = vadd.f32 %v981_v14, %v590_v29 }
  0xed   : > { %646 = vst [vmem:[%s993_s9 + $0x10] sm:$0xff] %v630_v30  ;;  %v636_v39 = vmax.f32 %v620_v31, 0.0  ;;  %v631_v40 = vmax.f32 %v615_v32, 0.0  ;;  %v621_v41 = vadd.f32 %v981_v14, %v598_v33 }
  0xee   : > { %v837_v38 = vpop.f32.mrb[4].mxu0  ;;  %654 = vst [vmem:[%s993_s9 + $0x50] sm:$0xff] %v638_v34  ;;  %644 = vst [vmem:[%s993_s9] sm:$0xff] %v628_v35  ;;  %v639_v44 = vmax.f32 %v623_v36, 0.0  ;;  %v629_v45 = vmax.f32 %v613_v37, 0.0 }
  0xef   : > { %v845_v42 = vpop.f32.mrb[4].mxu1  ;;  %v484_v43 = vpop.f32.mrb[5].mxu0  ;;  %652 = vst [vmem:[%s993_s9 + $0x40] sm:$0xff] %v636_v39  ;;  %647 = vst [vmem:[%s993_s9 + $0x18] sm:$0xff] %v631_v40  ;;  %v637_v48 = vmax.f32 %v621_v41, 0.0  ;;  %v595_v49 = vmul.f32 %v837_v38, %v976_v11 }
  0xf0   : > { %v516_v46 = vpop.f32.mrb[5].mxu1  ;;  %v838_v47 = vpop.f32.mrb[6].mxu0  ;;  %655 = vst [vmem:[%s993_s9 + $0x58] sm:$0xff] %v639_v44  ;;  %645 = vst [vmem:[%s993_s9 + $0x8] sm:$0xff] %v629_v45  ;;  %v603_v52 = vmul.f32 %v845_v42, %v976_v11  ;;  %v593_v53 = vmul.f32 %v976_v11, %v484_v43 }
  0xf1   : > { %v846_v50 = vpop.f32.mrb[6].mxu1  ;;  %v487_v51 = vpop.f32.mrb[7].mxu0  ;;  %653 = vst [vmem:[%s993_s9 + $0x48] sm:$0xff] %v637_v48  ;;  %v618_v55 = vadd.f32 %v981_v14, %v595_v49  ;;  %v601_v56 = vmul.f32 %v976_v11, %v516_v46  ;;  %v596_v57 = vmul.f32 %v838_v47, %v976_v11 }
  0xf2   : > { %v519_v54 = vpop.f32.mrb[7].mxu1  ;;  %v626_v58 = vadd.f32 %v981_v14, %v603_v52  ;;  %v616_v59 = vadd.f32 %v981_v14, %v593_v53  ;;  %v604_v60 = vmul.f32 %v846_v50, %v976_v11  ;;  %v594_v61 = vmul.f32 %v976_v11, %v487_v51 }
  0xf3   : > { %v634_v62 = vmax.f32 %v618_v55, 0.0  ;;  %v624_v63 = vadd.f32 %v981_v14, %v601_v56  ;;  %v619_v0 = vadd.f32 %v981_v14, %v596_v57  ;;  %v602_v1 = vmul.f32 %v976_v11, %v519_v54 }
  0xf4   : > { %v642_v2 = vmax.f32 %v626_v58, 0.0  ;;  %v632_v3 = vmax.f32 %v616_v59, 0.0  ;;  %v627_v4 = vadd.f32 %v981_v14, %v604_v60  ;;  %v617_v5 = vadd.f32 %v981_v14, %v594_v61 }
  0xf5   : > { %650 = vst [vmem:[%s993_s9 + $0x30] sm:$0xff] %v634_v62  ;;  %v640_v6 = vmax.f32 %v624_v63, 0.0  ;;  %v635_v7 = vmax.f32 %v619_v0, 0.0  ;;  %v625_v8 = vadd.f32 %v981_v14, %v602_v1 }
  0xf6   : > { %658 = vst [vmem:[%s993_s9 + $0x70] sm:$0xff] %v642_v2  ;;  %648 = vst [vmem:[%s993_s9 + $0x20] sm:$0xff] %v632_v3  ;;  %v643_v9 = vmax.f32 %v627_v4, 0.0  ;;  %v633_v10 = vmax.f32 %v617_v5, 0.0 }
  0xf7   : > { %656 = vst [vmem:[%s993_s9 + $0x60] sm:$0xff] %v640_v6  ;;  %651 = vst [vmem:[%s993_s9 + $0x38] sm:$0xff] %v635_v7  ;;  %v641_v11 = vmax.f32 %v625_v8, 0.0 }
  0xf8   : > { %659 = vst [vmem:[%s993_s9 + $0x78] sm:$0xff] %v643_v9  ;;  %649 = vst [vmem:[%s993_s9 + $0x28] sm:$0xff] %v633_v10 }
  0xf9   : > { %657 = vst [vmem:[%s993_s9 + $0x68] sm:$0xff] %v641_v11 }
  0xfa PF: > { %s14_s17 = sadd.s32 1, %s908_s17   ;;  %s1051_s15 = smov %s904_s16 }
  0xfb   : > { %p11_p5 = scmp.ge.s32.totalorder %s14_s17, 6   ;;  %s1052_s16 = smov %s1054_s18 }
  0xfd   :  { %13 = sbr.rel (!%p11_p5) target bundleno = 2 (0x2), region = 83 }

</bundles_post_ra>
